<compile_context>
chip_gen: v5e
topology: v5e:2x2
jax: 0.10.0
libtpu: 0.0.40
codegen_flags: <defaults>
</compile_context>

<pallas_src>
import functools
from math import gcd

import jax
import jax.numpy as jnp
from jax.experimental import pallas as pl
from jax.experimental.pallas import tpu as pltpu

_LANES = 128
_MAX_PACK_LANES = 512  # cap packed width at 4 vregs worth of lanes


def _chip_tuning():
    """Per-generation tile / VMEM sizing for this HBM-bound streaming kernel."""
    kind = ""
    try:
        kind = jax.devices()[0].device_kind.lower()
    except Exception:  # defensive: fall back to conservative (v5e) sizing
        pass
    if "7" in kind:  # v7x: ~3.2 TB/s HBM, 64 MiB VMEM/TC, 2 TCs/chip
        return dict(tile_bytes=4 * 1024 * 1024,
                    vmem_limit=48 * 1024 * 1024,
                    min_grid_steps=2)      # keep both TensorCores streaming
    if "v6" in kind or "6e" in kind:  # v6e: ~1.4 TB/s, 128 MiB physical VMEM
        return dict(tile_bytes=4 * 1024 * 1024,
                    vmem_limit=48 * 1024 * 1024,
                    min_grid_steps=1)
    # v5e / unknown: ~0.82 TB/s; 2 MiB tiles already <8% step overhead.
    return dict(tile_bytes=2 * 1024 * 1024,
                vmem_limit=32 * 1024 * 1024,
                min_grid_steps=1)


def _norm_kernel(*refs, eps, d, groups):
    """Normalizes `groups` independent d-wide segments packed along the last dim."""
    if groups > 1:
        x_ref, alpha_ref, bias_ref, seg_ref, o_ref = refs
    else:
        x_ref, alpha_ref, bias_ref, o_ref = refs

    x = x_ref[...].astype(jnp.float32)          # (rows, W)
    alpha = alpha_ref[...].astype(jnp.float32)  # (1, W)
    bias = bias_ref[...].astype(jnp.float32)    # (1, W)

    # torch.std default: unbiased estimator (divide by N-1).
    # TODO(synk): d == 1 yields NaN in torch (0/0 std); we clamp the ddof so the
    # kernel still compiles/runs for that degenerate configuration.
    inv_d = 1.0 / float(d)
    inv_ddof = 1.0 / float(max(d - 1, 1))

    if groups == 1:
        mean = jnp.mean(x, axis=-1, keepdims=True)
        centered = x - mean
        var = jnp.sum(centered * centered, axis=-1, keepdims=True) * inv_ddof
    else:
        # Segment reductions on the otherwise-idle MXU.  `seg` is a constant
        # (W, W) block-diagonal ones matrix (one d-wide block per packed group),
        # so each lane of (x @ seg) holds its own segment's sum, already
        # broadcast in place -> no lane-unaligned slices, no XLU reduces, no
        # concatenate.  Second matmul on centered**2 keeps numerically-safe
        # (non-cancelling) variance.  HIGHEST precision = true f32 on the MXU.
        seg = seg_ref[...].astype(jnp.float32)
        seg_sum = jnp.dot(x, seg, preferred_element_type=jnp.float32,
                          precision=jax.lax.Precision.HIGHEST)
        mean = seg_sum * inv_d
        centered = x - mean
        var = jnp.dot(centered * centered, seg,
                      preferred_element_type=jnp.float32,
                      precision=jax.lax.Precision.HIGHEST) * inv_ddof

    denom = jnp.sqrt(var) + eps             # eps added to the STD (torch)
    r = pl.reciprocal(denom, approx=True)   # EUP slot, essentially free
    r = r * (2.0 - denom * r)               # one Newton step -> ~f32 accuracy
    o_ref[...] = (alpha * (centered * r) + bias).astype(o_ref.dtype)


def _choose_tile_rows(n_rows, width, dtype, target_bytes, min_grid_steps=1):
    itemsize = jnp.dtype(dtype).itemsize
    # Sublane packing alignment: 8 rows (f32), 16 (bf16), 32 (int8/fp8).
    align = max(8, 8 * (4 // max(1, itemsize)))
    # VMEM pads the last dim to a multiple of 128 lanes; size the tile on the
    # padded width so the VMEM footprint (not just HBM bytes) stays bounded.
    padded_width = ((width + _LANES - 1) // _LANES) * _LANES
    desired = target_bytes // max(1, padded_width * itemsize)
    desired = max(align, (desired // align) * align)
    if min_grid_steps > 1:
        # v7x: keep >= min_grid_steps grid steps so the "parallel" row axis can
        # shard across both TensorCores instead of idling one of them.
        cap = -(-n_rows // min_grid_steps)
        cap = max(align, (cap // align) * align)
        desired = min(desired, cap)
    if n_rows <= desired:
        return n_rows  # single block; block dim == full array dim is always legal
    return desired


def norm_forward(x, alpha, bias, *, eps=1e-6, target_tile_bytes=None):
    """Applies Norm over the last axis of x (any leading shape)."""
    orig_shape = x.shape
    d = orig_shape[-1]
    tuning = _chip_tuning()
    if target_tile_bytes is None:
        target_tile_bytes = tuning["tile_bytes"]

    x2 = x.reshape(-1, d)
    rows = x2.shape[0]

    # Lane-dense packing: fold `groups` logical rows side-by-side so the last
    # (lane) dim is a multiple of 128 -> unmasked full-width stores.
    groups = 1
    if d % _LANES != 0:
        lcm = d * _LANES // gcd(d, _LANES)
        if lcm <= _MAX_PACK_LANES:
            groups = lcm // d

    width = groups * d
    pad_rows = 0
    if groups > 1:
        pad_rows = (-rows) % groups
        if pad_rows:
            # Cheap leading-dim pad so the main call always writes lane-dense
            # rows (no masked 32-lane store fallback).  Zero rows normalize to
            # finite values (std 0 -> denom = eps) and are sliced off below.
            x2 = jnp.pad(x2, ((0, pad_rows), (0, 0)))
        packed_rows = (rows + pad_rows) // groups
        xp = x2.reshape(packed_rows, width)  # contiguous reshape: free
    else:
        packed_rows = rows
        xp = x2

    alpha_p = jnp.tile(alpha.reshape(1, d), (1, groups))
    bias_p = jnp.tile(bias.reshape(1, d), (1, groups))

    tile_rows = _choose_tile_rows(packed_rows, width, x.dtype,
                                  target_tile_bytes, tuning["min_grid_steps"])
    grid = (pl.cdiv(packed_rows, tile_rows),)

    kernel = functools.partial(_norm_kernel, eps=float(eps), d=d, groups=groups)

    in_specs = [
        pl.BlockSpec((tile_rows, width), lambda i: (i, 0)),
        pl.BlockSpec((1, width), lambda i: (0, 0)),
        pl.BlockSpec((1, width), lambda i: (0, 0)),
    ]
    inputs = [xp, alpha_p, bias_p]
    if groups > 1:
        # Constant block-diagonal segment-sum matrix; constant index_map keeps
        # it resident in VMEM across all grid steps.
        lane_seg = jnp.arange(width, dtype=jnp.int32) // d
        seg = (lane_seg[:, None] == lane_seg[None, :]).astype(jnp.float32)
        in_specs.append(pl.BlockSpec((width, width), lambda i: (0, 0)))
        inputs.append(seg)

    out = pl.pallas_call(
        kernel,
        out_shape=jax.ShapeDtypeStruct((packed_rows, width), x.dtype),
        grid_spec=pltpu.PrefetchScalarGridSpec(
            num_scalar_prefetch=0,
            grid=grid,
            in_specs=in_specs,
            out_specs=pl.BlockSpec((tile_rows, width), lambda i: (i, 0)),
        ),
        compiler_params=pltpu.CompilerParams(
            # Row blocks are independent -> shards across v7x's 2 TensorCores.
            dimension_semantics=("parallel",),
            vmem_limit_bytes=tuning["vmem_limit"],
        ),
    )(*inputs)

    if groups > 1:
        out = out.reshape(packed_rows * groups, d)
        if pad_rows:
            out = out[:rows]
    return out.reshape(orig_shape)


def _reference(x, alpha, bias, eps):
    d = x.shape[-1]
    mean = x.mean(axis=-1, keepdims=True)
    std = jnp.sqrt(jnp.sum((x - mean) ** 2, axis=-1, keepdims=True) / (d - 1))
    return alpha * (x - mean) / (std + eps) + bias


if __name__ == "__main__":
    key = jax.random.PRNGKey(0)
    k0, k1, k2, k3 = jax.random.split(key, 4)

    # 1) Shapes implied by the module: (batch=2, seq=8, effective_d=32).
    batch, seq, effective_d = 2, 8, 32
    x = jax.random.normal(k0, (batch, seq, effective_d), dtype=jnp.float32)
    alpha = jnp.ones((effective_d,), dtype=jnp.float32)   # nn.Parameter(torch.ones)
    bias = jnp.zeros((effective_d,), dtype=jnp.float32)   # nn.Parameter(torch.zeros)
    out = jax.block_until_ready(norm_forward(x, alpha, bias, eps=1e-6))
    ref = _reference(x, alpha, bias, 1e-6)
    assert jnp.allclose(out, ref, atol=1e-4, rtol=1e-4), "packed (MXU) path mismatch"

    # 2) d already lane-dense (d == 128); row count forces multiple grid steps
    #    including a partial tail block (no padding needed).
    d2 = 128
    xb = jax.random.normal(k1, (3, 5, d2), dtype=jnp.float32)
    alpha2 = jax.random.normal(jax.random.PRNGKey(1), (d2,), dtype=jnp.float32)
    bias2 = jax.random.normal(jax.random.PRNGKey(2), (d2,), dtype=jnp.float32)
    out2 = jax.block_until_ready(
        norm_forward(xb, alpha2, bias2, eps=1e-6, target_tile_bytes=4096))
    ref2 = _reference(xb, alpha2, bias2, 1e-6)
    assert jnp.allclose(out2, ref2, atol=1e-4, rtol=1e-4), "tiled path mismatch"

    # 3) d that does not divide 128 (d=48 -> width=lcm=384) and a row count
    #    that needs the leading-dim pad (14 rows, pack factor 8).
    d3 = 48
    xc = jax.random.normal(k2, (2, 7, d3), dtype=jnp.float32)
    alpha3 = jax.random.normal(jax.random.PRNGKey(3), (d3,), dtype=jnp.float32)
    bias3 = jax.random.normal(jax.random.PRNGKey(4), (d3,), dtype=jnp.float32)
    out3 = jax.block_until_ready(norm_forward(xc, alpha3, bias3, eps=1e-6))
    ref3 = _reference(xc, alpha3, bias3, 1e-6)
    assert jnp.allclose(out3, ref3, atol=1e-4, rtol=1e-4), "lcm-packed path mismatch"

    # 4) Packed (groups>1) path with several grid steps and a partial tail.
    xd = jax.random.normal(k3, (2, 50, effective_d), dtype=jnp.float32)
    out4 = jax.block_until_ready(
        norm_forward(xd, alpha, bias, eps=1e-6, target_tile_bytes=4096))
    ref4 = _reference(xd, alpha, bias, 1e-6)
    assert jnp.allclose(out4, ref4, atol=1e-4, rtol=1e-4), "multi-step packed mismatch"

    print("KERNEL_OK")
</pallas_src>

<mosaic_0001>
module attributes {stable_mosaic.version = 11 : i64} {
  func.func @_norm_kernel(%arg0: i32, %arg1: memref<4x128xf32, #tpu.memory_space<vmem>>, %arg2: memref<1x128xf32, #tpu.memory_space<vmem>>, %arg3: memref<1x128xf32, #tpu.memory_space<vmem>>, %arg4: memref<128x128xf32, #tpu.memory_space<vmem>>, %arg5: memref<4x128xf32, #tpu.memory_space<vmem>>) attributes {dimension_semantics = [#tpu.dimension_semantics<parallel>], iteration_bounds = array<i64: 1>, scalar_prefetch = 0 : i64, scratch_operands = 0 : i64, tpu.core_type = #tpu.core_type<tc>, window_params = [{transform_indices = @transform_0, window_bounds = array<i64: 4, 128>}, {pipeline_mode = #tpu.pipeline_mode<synchronous>, transform_indices = @transform_1, window_bounds = array<i64: 1, 128>}, {pipeline_mode = #tpu.pipeline_mode<synchronous>, transform_indices = @transform_2, window_bounds = array<i64: 1, 128>}, {pipeline_mode = #tpu.pipeline_mode<synchronous>, transform_indices = @transform_3, window_bounds = array<i64: 128, 128>}, {transform_indices = @transform_4, window_bounds = array<i64: 4, 128>}]} {
    %c0 = arith.constant 0 : index
    %c0_0 = arith.constant 0 : index
    %0 = vector.load %arg1[%c0, %c0_0] : memref<4x128xf32, #tpu.memory_space<vmem>>, vector<4x128xf32>
    %c0_1 = arith.constant 0 : index
    %c0_2 = arith.constant 0 : index
    %1 = vector.load %arg2[%c0_1, %c0_2] : memref<1x128xf32, #tpu.memory_space<vmem>>, vector<1x128xf32>
    %c0_3 = arith.constant 0 : index
    %c0_4 = arith.constant 0 : index
    %2 = vector.load %arg3[%c0_3, %c0_4] : memref<1x128xf32, #tpu.memory_space<vmem>>, vector<1x128xf32>
    %c0_5 = arith.constant 0 : index
    %c0_6 = arith.constant 0 : index
    %3 = vector.load %arg4[%c0_5, %c0_6] : memref<128x128xf32, #tpu.memory_space<vmem>>, vector<128x128xf32>
    %cst = arith.constant dense<0.000000e+00> : vector<4x128xf32>
    %4 = tpu.matmul %0, %3, %cst {dimension_numbers = #tpu.dot_dimension_numbers<[1], [0], [0], [1], [0, 0, 1, 1], [], []>, precision = #tpu.contract_precision<fp32>} : vector<4x128xf32>, vector<128x128xf32>, vector<4x128xf32> -> vector<4x128xf32>
    %cst_7 = arith.constant 3.125000e-02 : f32
    %5 = vector.broadcast %cst_7 : f32 to vector<4x128xf32>
    %6 = arith.mulf %4, %5 : vector<4x128xf32>
    %7 = arith.subf %0, %6 : vector<4x128xf32>
    %8 = arith.mulf %7, %7 : vector<4x128xf32>
    %cst_8 = arith.constant dense<0.000000e+00> : vector<4x128xf32>
    %9 = tpu.matmul %8, %3, %cst_8 {dimension_numbers = #tpu.dot_dimension_numbers<[1], [0], [0], [1], [0, 0, 1, 1], [], []>, precision = #tpu.contract_precision<fp32>} : vector<4x128xf32>, vector<128x128xf32>, vector<4x128xf32> -> vector<4x128xf32>
    %cst_9 = arith.constant 0.0322580636 : f32
    %10 = vector.broadcast %cst_9 : f32 to vector<4x128xf32>
    %11 = arith.mulf %9, %10 : vector<4x128xf32>
    %12 = math.sqrt %11 : vector<4x128xf32>
    %cst_10 = arith.constant 9.99999997E-7 : f32
    %13 = vector.broadcast %cst_10 : f32 to vector<4x128xf32>
    %14 = arith.addf %12, %13 : vector<4x128xf32>
    %15 = tpu.reciprocal %14 {approx = true} : vector<4x128xf32> -> vector<4x128xf32>
    %16 = arith.mulf %14, %15 : vector<4x128xf32>
    %cst_11 = arith.constant 2.000000e+00 : f32
    %17 = vector.broadcast %cst_11 : f32 to vector<4x128xf32>
    %18 = arith.subf %17, %16 : vector<4x128xf32>
    %19 = arith.mulf %15, %18 : vector<4x128xf32>
    %20 = arith.mulf %7, %19 : vector<4x128xf32>
    %21 = vector.broadcast %1 : vector<1x128xf32> to vector<4x128xf32>
    %22 = arith.mulf %21, %20 : vector<4x128xf32>
    %23 = vector.broadcast %2 : vector<1x128xf32> to vector<4x128xf32>
    %24 = arith.addf %22, %23 : vector<4x128xf32>
    %c0_12 = arith.constant 0 : index
    %c0_13 = arith.constant 0 : index
    %25 = vector.load %arg5[%c0_12, %c0_13] : memref<4x128xf32, #tpu.memory_space<vmem>>, vector<4x128xf32>
    tpu.vector_store %arg5[%c0_12, %c0_13], %24 {strides = array<i32>} : memref<4x128xf32, #tpu.memory_space<vmem>>, vector<4x128xf32>,
    return
  }
  func.func @transform_0(%arg0: i32) -> (i32, i32) {
    %c0_i32 = arith.constant 0 : i32
    %c0_i32_0 = arith.constant 0 : i32
    return %arg0, %c0_i32 : i32, i32
  }
  func.func @transform_1(%arg0: i32) -> (i32, i32) {
    %c0_i32 = arith.constant 0 : i32
    %c0_i32_0 = arith.constant 0 : i32
    %c0_i32_1 = arith.constant 0 : i32
    return %c0_i32, %c0_i32_0 : i32, i32
  }
  func.func @transform_2(%arg0: i32) -> (i32, i32) {
    %c0_i32 = arith.constant 0 : i32
    %c0_i32_0 = arith.constant 0 : i32
    %c0_i32_1 = arith.constant 0 : i32
    return %c0_i32, %c0_i32_0 : i32, i32
  }
  func.func @transform_3(%arg0: i32) -> (i32, i32) {
    %c0_i32 = arith.constant 0 : i32
    %c0_i32_0 = arith.constant 0 : i32
    %c0_i32_1 = arith.constant 0 : i32
    return %c0_i32, %c0_i32_0 : i32, i32
  }
  func.func @transform_4(%arg0: i32) -> (i32, i32) {
    %c0_i32 = arith.constant 0 : i32
    %c0_i32_0 = arith.constant 0 : i32
    return %arg0, %c0_i32 : i32, i32
  }
}

</mosaic_0001>

<bundles_post_ra>
// kernel: tpu_custom_call.1
= control target key start
LH: loop header
LB: loop body
LE: loop exit
PB: predicated region body
PF: predicated region fallthrough
CT: control target
= control target key end

     0   :  { %9 = vsyncpa [#allocation3], 0  ;;  %s1366_s0 = inlined_call_operand.hbm [shape: f32[4,128], index: 0, kind: input, shape index: {}]   ;;  %s1367_s1 = inlined_call_operand.hbm [shape: f32[1,128], index: 1, kind: input, shape index: {}]   ;;  %s1368_s2 = inlined_call_operand.vmem [shape: f32[1,128], index: 2, kind: input, shape index: {}]   ;;  %s1369_s3 = inlined_call_operand.hbm [shape: f32[128,128], index: 3, kind: input, shape index: {}]   ;;  %s1370_s4 = inlined_call_operand.hbm [shape: f32[4,128], index: 4, kind: output, shape index: {}]  }
   0x1   :  { %10 = vsyncpa [#allocation6], 0  ;;  %s28_s17 = sshll.u32 %s1367_s1, 4  ;;  %s29_s17 = int_to_ptr.hbm [resolvable:$true] %s28_s17 }
   0x2   :  { %11 = vsyncpa [#allocation4], 0  ;;  %s925_s18 = smov [#allocation5]   ;;  %s17_s22 = sshll.u32 %s1366_s0, 4  ;;  %s18_s22 = int_to_ptr.hbm [resolvable:$true] %s17_s22 }
   0x3   :  { %s30_s19 = sshll.u32 %s925_s18, 4  ;;  %s926_s23 = smov [#allocation2]   ;;  %s31_s19 = int_to_ptr.vmem [resolvable:$true] %s30_s19 }
   0x4   :  { %33 = dma.hbm_to_vmem [thread:$0]  %s29_s17, 16, %s31_s19, [#allocation6]  }
   0x5   :  { %s19_s24 = sshll.u32 %s926_s23, 4  ;;  %s40_s27 = sshll.u32 %s1369_s3, 4  ;;  %s20_s24 = int_to_ptr.vmem [resolvable:$true] %s19_s24  ;;  %s41_s27 = int_to_ptr.hbm [resolvable:$true] %s40_s27 }
   0x6   :  { %22 = dma.hbm_to_vmem [thread:$0]  %s18_s22, 64, %s20_s24, [#allocation3]  }
   0x7   :  { %s927_s1 = smov [#allocation7]   ;;  %s928_s29 = smov 128  }
   0x8   :  { %s42_s28 = sshll.u32 %s927_s1, 4  ;;  %s929_s30 = smov 8   ;;  %s43_s28 = int_to_ptr.vmem [resolvable:$true] %s42_s28 }
   0x9   :  { %48 = dma.hbm_to_vmem [thread:$0]  %s41_s27, 2048, %s43_s28, [#allocation6], %s928_s29, %s928_s29, %s929_s30  }
   0xa   :  { %919 = dma.done.wait [#allocation3], 64  }
   0xb   :  { %920 = vsyncadd [#allocation3], 4294967232 }
   0xc   :  { %921 = dma.done.wait [#allocation6], 2064  }
   0xd   :  { %922 = vsyncadd [#allocation6], 4294965232  ;;  %v79_v0 = vld [vmem:[#allocation7 + $0x78] sm:$0xff]  ;;  %v78_v1 = vld [vmem:[#allocation7 + $0x70] sm:$0xff]  ;;  %s930_s5 = smov [#allocation8]   ;;  %s800_s9 = sshll.u32 %s1370_s4, 4  ;;  %s801_s9 = int_to_ptr.hbm [resolvable:$true] %s800_s9 }
   0xe   :  { %v77_v2 = vld [vmem:[#allocation7 + $0x68] sm:$0xff]  ;;  %v965_v3 = vand.u32 4294901760, %v79_v0  ;;  %v967_v4 = vand.u32 4294901760, %v78_v1  ;;  %v76_v6 = vld [vmem:[#allocation7 + $0x60] sm:$0xff]  ;;  %v75_v7 = vld [vmem:[#allocation7 + $0x58] sm:$0xff]  ;;  %s798_s6 = sshll.u32 %s930_s5, 4  ;;  %s799_s6 = int_to_ptr.vmem [resolvable:$true] %s798_s6 }
   0xf   :  { %v969_v5 = vand.u32 4294901760, %v77_v2  ;;  %v74_v8 = vld [vmem:[#allocation7 + $0x50] sm:$0xff]  ;;  %v971_v9 = vand.u32 4294901760, %v76_v6  ;;  %v973_v10 = vand.u32 4294901760, %v75_v7  ;;  %v73_v12 = vld [vmem:[#allocation7 + $0x48] sm:$0xff]  ;;  %v72_v13 = vld [vmem:[#allocation7 + $0x40] sm:$0xff] }
  0x10   :  { %v975_v11 = vand.u32 4294901760, %v74_v8  ;;  %81 = vmatpush.msra.mxu0 %v965_v3  ;;  %v979_v14 = vsub.f32 %v79_v0, %v965_v3  ;;  %v982_v15 = vsub.f32 %v78_v1, %v967_v4  ;;  %v987_v17 = vand.u32 4294901760, %v73_v12  ;;  %v71_v18 = vld [vmem:[#allocation7 + $0x38] sm:$0xff]  ;;  %277 = vmatpush.msra.mxu3 %v965_v3  ;;  %v70_v26 = vld [vmem:[#allocation7 + $0x30] sm:$0xff]  ;;  %v69_v36 = vld [vmem:[#allocation7 + $0x28] sm:$0xff] }
  0x11   :  { %v985_v16 = vsub.f32 %v77_v2, %v969_v5  ;;  %v991_v19 = vsub.f32 %v76_v6, %v971_v9  ;;  %v994_v20 = vsub.f32 %v75_v7, %v973_v10  ;;  %v1009_v25 = vand.u32 4294901760, %v72_v13  ;;  %v68_v42 = vld [vmem:[#allocation7 + $0x20] sm:$0xff]  ;;  %v67_v47 = vld [vmem:[#allocation7 + $0x18] sm:$0xff]  ;;  %v66_v55 = vld [vmem:[#allocation7 + $0x10] sm:$0xff] }
  0x12   :  { %v997_v21 = vsub.f32 %v74_v8, %v975_v11  ;;  %83 = vmatpush.msra.mxu0 %v967_v4  ;;  %v1001_v22 = vand.u32 4294901760, %v979_v14  ;;  %v1004_v23 = vand.u32 4294901760, %v982_v15  ;;  %224 = vmatpush.msra.mxu2 %v979_v14  ;;  %v1015_v28 = vand.u32 4294901760, %v71_v18  ;;  %v65_v60 = vld [vmem:[#allocation7 + $0x8] sm:$0xff]  ;;  %v64_v1 = vld [vmem:[#allocation7] sm:$0xff] }
  0x13   :  { %v1007_v24 = vand.u32 4294901760, %v985_v16  ;;  %v1013_v27 = vand.u32 4294901760, %v991_v19  ;;  %v1018_v29 = vsub.f32 %v73_v12, %v987_v17  ;;  %279 = vmatpush.msra.mxu3 %v967_v4  ;;  %v1029_v33 = vand.u32 4294901760, %v994_v20  ;;  %v1119_v7 = vld [vmem:[#allocation2] sm:$0xf] }
  0x14   :  { %85 = vmatpush.msra.mxu0 %v969_v5  ;;  %v124_v30 = vsub.f32 %v979_v14, %v1001_v22  ;;  %v130_v31 = vsub.f32 %v982_v15, %v1004_v23  ;;  %227 = vmatpush.msra.mxu2 %v982_v15  ;;  %v1033_v34 = vand.u32 4294901760, %v997_v21  ;;  %v1035_v35 = vand.u32 4294901760, %v70_v26  ;;  %1385 = vst [vmem:[#allocation18_spill] sm:$0xff] %v1119_v7 }
  0x15   :  { %v136_v32 = vsub.f32 %v985_v16, %v1007_v24  ;;  %281 = vmatpush.msra.mxu3 %v969_v5  ;;  %v142_v39 = vsub.f32 %v991_v19, %v1013_v27  ;;  %v1046_v40 = vsub.f32 %v72_v13, %v1009_v25  ;;  %v1050_v41 = vand.u32 4294901760, %v1018_v29 }
  0x16   :  { %v1038_v37 = vand.u32 4294901760, %v124_v30  ;;  %87 = vmatpush.msra.mxu0 %v971_v9  ;;  %v1041_v38 = vand.u32 4294901760, %v130_v31  ;;  %230 = vmatpush.msra.mxu2 %v985_v16  ;;  %v148_v44 = vsub.f32 %v994_v20, %v1029_v33  ;;  %v1059_v45 = vand.u32 4294901760, %v69_v36 }
  0x17   :  { %1379 = vst [vmem:[#allocation12_spill] sm:$0xff] %v1046_v40  ;;  %283 = vmatpush.msra.mxu3 %v971_v9  ;;  %v1055_v43 = vand.u32 4294901760, %v136_v32  ;;  %v1062_v46 = vsub.f32 %v71_v18, %v1015_v28  ;;  %v154_v48 = vsub.f32 %v997_v21, %v1033_v34  ;;  %v1070_v49 = vand.u32 4294901760, %v142_v39 }
  0x18   :  { %126 = vmatpush.msra.mxu1 %v1038_v37  ;;  %89 = vmatpush.msra.mxu0 %v973_v10  ;;  %v1073_v50 = vand.u32 4294901760, %v1046_v40  ;;  %v1075_v51 = vand.u32 4294901760, %v68_v42  ;;  %v1078_v52 = vsub.f32 %v70_v26, %v1035_v35  ;;  %v160_v53 = vsub.f32 %v1018_v29, %v1050_v41 }
  0x19   :  { %1380 = vst [vmem:[#allocation13_spill] sm:$0xff] %v1062_v46  ;;  %233 = vmatpush.msra.mxu2 %v991_v19  ;;  %285 = vmatpush.msra.mxu3 %v973_v10  ;;  %v1082_v54 = vand.u32 4294901760, %v67_v47  ;;  %v1088_v56 = vand.u32 4294901760, %v148_v44  ;;  %v1091_v57 = vand.u32 4294901760, %v1062_v46  ;;  %v1094_v58 = vsub.f32 %v69_v36, %v1059_v45 }
  0x1a   :  { %132 = vmatpush.msra.mxu1 %v1041_v38  ;;  %91 = vmatpush.msra.mxu0 %v975_v11  ;;  %1381 = vst [vmem:[#allocation14_spill] sm:$0xff] %v1078_v52  ;;  %v1096_v59 = vand.u32 4294901760, %v154_v48  ;;  %v166_v61 = vsub.f32 %v1046_v40, %v1073_v50  ;;  %v1105_v62 = vand.u32 4294901760, %v1078_v52  ;;  %v1107_v63 = vand.u32 4294901760, %v66_v55 }
  0x1b   :  { %236 = vmatpush.msra.mxu2 %v994_v20  ;;  %287 = vmatpush.msra.mxu3 %v975_v11  ;;  %1382 = vst [vmem:[#allocation15_spill] sm:$0xff] %v1094_v58  ;;  %v1110_v0 = vsub.f32 %v68_v42, %v1075_v51  ;;  %v1112_v2 = vand.u32 4294901760, %v160_v53  ;;  %v1115_v6 = vsub.f32 %v67_v47, %v1082_v54  ;;  %v1126_v12 = vand.u32 4294901760, %v1094_v58 }
  0x1c   :  { %138 = vmatpush.msra.mxu1 %v1055_v43  ;;  %93 = vmatpush.msra.mxu0 %v987_v17  ;;  %v172_v8 = vsub.f32 %v1062_v46, %v1091_v57  ;;  %v1128_v13 = vand.u32 4294901760, %v65_v60  ;;  %v1131_v18 = vand.u32 4294901760, %v1119_v7  ;;  %v1133_v26 = vand.u32 4294901760, %v64_v1 }
  0x1d   :  { %239 = vmatpush.msra.mxu2 %v997_v21  ;;  %289 = vmatpush.msra.mxu3 %v987_v17  ;;  %1383 = vst [vmem:[#allocation16_spill] sm:$0xff] %v1110_v0  ;;  %v1139_v30 = vand.u32 4294901760, %v166_v61  ;;  %v178_v31 = vsub.f32 %v1078_v52, %v1105_v62  ;;  %v1144_v32 = vand.u32 4294901760, %v1110_v0  ;;  %v1147_v36 = vsub.f32 %v66_v55, %v1107_v63 }
  0x1e   :  { %144 = vmatpush.msra.mxu1 %v1070_v49  ;;  %95 = vmatpush.msra.mxu0 %v1009_v25  ;;  %1384 = vst [vmem:[#allocation17_spill] sm:$0xff] %v1115_v6  ;;  %v1150_v39 = vand.u32 4294901760, %v1115_v6  ;;  %v1156_v42 = vand.u32 4294901760, %v172_v8  ;;  %v184_v44 = vsub.f32 %v1094_v58, %v1126_v12  ;;  %v1161_v47 = vsub.f32 %v65_v60, %v1128_v13 }
  0x1f   :  { %242 = vmatpush.msra.mxu2 %v1018_v29  ;;  %291 = vmatpush.msra.mxu3 %v1009_v25  ;;  %1386 = vst [vmem:[#allocation19_spill] sm:$0xff] %v1147_v36  ;;  %v113_v48 = vsub.f32 %v1119_v7, %v1131_v18  ;;  %v1169_v53 = vand.u32 4294901760, %v178_v31  ;;  %v190_v55 = vsub.f32 %v1110_v0, %v1144_v32  ;;  %v1174_v61 = vand.u32 4294901760, %v1147_v36 }
  0x20   :  { %150 = vmatpush.msra.mxu1 %v1088_v56  ;;  %97 = vmatpush.msra.mxu0 %v1015_v28  ;;  %v1177_v60 = vsub.f32 %v64_v1, %v1133_v26  ;;  %v1183_v8 = vand.u32 4294901760, %v184_v44  ;;  %v196_v31 = vsub.f32 %v1115_v6, %v1150_v39  ;;  %v1188_v7 = vand.u32 4294901760, %v1161_v47 }
  0x21   :  { %245 = vmatpush.msra.mxu2 %v1046_v40  ;;  %293 = vmatpush.msra.mxu3 %v1015_v28  ;;  %v1194_v1 = vand.u32 4294901760, %v190_v55  ;;  %v202_v44 = vsub.f32 %v1147_v36, %v1174_v61 }
  0x22   :  { %156 = vmatpush.msra.mxu1 %v1096_v59  ;;  %99 = vmatpush.msra.mxu0 %v1035_v35  ;;  %v208_v55 = vsub.f32 %v1161_v47, %v1188_v7 }
  0x23   :  { %248 = vmatpush.msra.mxu2 %v1062_v46  ;;  %295 = vmatpush.msra.mxu3 %v1035_v35 }
  0x24   :  { %162 = vmatpush.msra.mxu1 %v1112_v2  ;;  %101 = vmatpush.msra.mxu0 %v1059_v45 }
  0x25   :  { %251 = vmatpush.msra.mxu2 %v1078_v52  ;;  %297 = vmatpush.msra.mxu3 %v1059_v45  ;;  %v114_v52 = vand.u32 4294901760, %v113_v48 }
  0x26   :  { %168 = vmatpush.msra.mxu1 %v1139_v30  ;;  %103 = vmatpush.msra.mxu0 %v1075_v51 }
  0x27   :  { %254 = vmatpush.msra.mxu2 %v1094_v58  ;;  %299 = vmatpush.msra.mxu3 %v1075_v51  ;;  %v1199_v58 = vand.u32 4294901760, %v1177_v60  ;;  %v115_v46 = vsub.f32 %v113_v48, %v114_v52 }
  0x28   :  { %174 = vmatpush.msra.mxu1 %v1156_v42  ;;  %105 = vmatpush.msra.mxu0 %v1082_v54 }
  0x29   :  { %257 = vmatpush.msra.mxu2 %v1110_v0  ;;  %301 = vmatpush.msra.mxu3 %v1082_v54  ;;  %v1205_v0 = vand.u32 4294901760, %v196_v31  ;;  %v214_v40 = vsub.f32 %v1177_v60, %v1199_v58  ;;  %v1220_v31 = vand.u32 4294901760, %v208_v55 }
  0x2a   :  { %180 = vmatpush.msra.mxu1 %v1169_v53  ;;  %107 = vmatpush.msra.mxu0 %v1107_v63 }
  0x2b   :  { %260 = vmatpush.msra.mxu2 %v1115_v6  ;;  %303 = vmatpush.msra.mxu3 %v1107_v63  ;;  %v1213_v6 = vand.u32 4294901760, %v202_v44  ;;  %v1226_v44 = vand.u32 4294901760, %v214_v40 }
  0x2c   :  { %186 = vmatpush.msra.mxu1 %v1183_v8  ;;  %109 = vmatpush.msra.mxu0 %v1128_v13 }
  0x2d   :  { %263 = vmatpush.msra.mxu2 %v1147_v36  ;;  %305 = vmatpush.msra.mxu3 %v1128_v13  ;;  %v116_v36 = vand.u32 4294901760, %v115_v46 }
  0x2e   :  { %192 = vmatpush.msra.mxu1 %v1194_v1  ;;  %111 = vmatpush.msra.mxu0 %v1133_v26 }
  0x2f   :  { %266 = vmatpush.msra.mxu2 %v1161_v47  ;;  %307 = vmatpush.msra.mxu3 %v1133_v26 }
  0x30   :  { %318 = vmatpush.msrb.mxu0 %v1001_v22  ;;  %198 = vmatpush.msra.mxu1 %v1205_v0 }
  0x31   :  { %269 = vmatpush.msra.mxu2 %v1177_v60  ;;  %311 = vmatmul.f32.vlgmr.msra.gmra.mxu3 %v114_v52 }
  0x32   :  { %322 = vmatpush.msrb.mxu0 %v1004_v23  ;;  %204 = vmatpush.msra.mxu1 %v1213_v6 }
  0x33   :  { %272 = vmatmul.f32.vlgmr.msra.gmra.mxu2 %v113_v48  ;;  %117 = vmatmul.f32.vlgmr.msra.gmra.mxu0 %v116_v36 }
  0x34   :  { %326 = vmatpush.msrb.mxu0 %v1007_v24  ;;  %210 = vmatpush.msra.mxu1 %v1220_v31 }
  0x35   :  { %470 = vmatpush.msrb.mxu3 %v1038_v37  ;;  %425 = vmatpush.msrb.mxu2 %v965_v3 }
  0x36   :  { %330 = vmatpush.msrb.mxu0 %v1013_v27  ;;  %216 = vmatpush.msra.mxu1 %v1226_v44 }
  0x37   :  { %218 = vmatmul.f32.vlgmr.msra.gmra.mxu1 %v1131_v18  ;;  %476 = vmatpush.msrb.mxu3 %v1041_v38 }
  0x38   :  { %385 = vmatpush.msrb.mxu1 %v965_v3  ;;  %334 = vmatpush.msrb.mxu0 %v1029_v33 }
  0x39   :  { %482 = vmatpush.msrb.mxu3 %v1055_v43  ;;  %427 = vmatpush.msrb.mxu2 %v967_v4 }
  0x3a   :  { %387 = vmatpush.msrb.mxu1 %v967_v4  ;;  %338 = vmatpush.msrb.mxu0 %v1033_v34 }
  0x3b   :  { %488 = vmatpush.msrb.mxu3 %v1070_v49  ;;  %429 = vmatpush.msrb.mxu2 %v969_v5 }
  0x3c   :  { %389 = vmatpush.msrb.mxu1 %v969_v5  ;;  %342 = vmatpush.msrb.mxu0 %v1050_v41 }
  0x3d   :  { %494 = vmatpush.msrb.mxu3 %v1088_v56  ;;  %431 = vmatpush.msrb.mxu2 %v971_v9 }
  0x3e   :  { %391 = vmatpush.msrb.mxu1 %v971_v9  ;;  %346 = vmatpush.msrb.mxu0 %v1073_v50 }
  0x3f   :  { %500 = vmatpush.msrb.mxu3 %v1096_v59  ;;  %433 = vmatpush.msrb.mxu2 %v973_v10 }
  0x40   :  { %393 = vmatpush.msrb.mxu1 %v973_v10  ;;  %350 = vmatpush.msrb.mxu0 %v1091_v57 }
  0x41   :  { %506 = vmatpush.msrb.mxu3 %v1112_v2  ;;  %435 = vmatpush.msrb.mxu2 %v975_v11 }
  0x42   :  { %395 = vmatpush.msrb.mxu1 %v975_v11  ;;  %354 = vmatpush.msrb.mxu0 %v1105_v62 }
  0x43   :  { %512 = vmatpush.msrb.mxu3 %v1139_v30  ;;  %437 = vmatpush.msrb.mxu2 %v987_v17 }
  0x44   :  { %397 = vmatpush.msrb.mxu1 %v987_v17  ;;  %358 = vmatpush.msrb.mxu0 %v1126_v12 }
  0x45   :  { %518 = vmatpush.msrb.mxu3 %v1156_v42  ;;  %439 = vmatpush.msrb.mxu2 %v1009_v25 }
  0x46   :  { %399 = vmatpush.msrb.mxu1 %v1009_v25  ;;  %362 = vmatpush.msrb.mxu0 %v1144_v32 }
  0x47   :  { %524 = vmatpush.msrb.mxu3 %v1169_v53  ;;  %441 = vmatpush.msrb.mxu2 %v1015_v28  ;;  %v818_v53 = vld [vmem:[%s1368_s2] ss:$0 sm:$0xff] }
  0x48   :  { %401 = vmatpush.msrb.mxu1 %v1015_v28  ;;  %366 = vmatpush.msrb.mxu0 %v1150_v39 }
  0x49   :  { %530 = vmatpush.msrb.mxu3 %v1183_v8  ;;  %443 = vmatpush.msrb.mxu2 %v1035_v35 }
  0x4a   :  { %403 = vmatpush.msrb.mxu1 %v1035_v35  ;;  %370 = vmatpush.msrb.mxu0 %v1174_v61 }
  0x4b   :  { %536 = vmatpush.msrb.mxu3 %v1194_v1  ;;  %445 = vmatpush.msrb.mxu2 %v1059_v45 }
  0x4c   :  { %405 = vmatpush.msrb.mxu1 %v1059_v45  ;;  %374 = vmatpush.msrb.mxu0 %v1188_v7 }
  0x4d   :  { %542 = vmatpush.msrb.mxu3 %v1205_v0  ;;  %447 = vmatpush.msrb.mxu2 %v1075_v51 }
  0x4e   :  { %407 = vmatpush.msrb.mxu1 %v1075_v51  ;;  %378 = vmatpush.msrb.mxu0 %v1199_v58 }
  0x4f   :  { %380 = vmatmul.f32.vlgmr.msrb.gmra.mxu0 %v1131_v18  ;;  %548 = vmatpush.msrb.mxu3 %v1213_v6 }
  0x50   :  { %409 = vmatpush.msrb.mxu1 %v1082_v54  ;;  %568 = vmatpush.msra.mxu0 %v979_v14  ;;  %v1393_v14 = vld [vmem:[#allocation19_spill] sm:$0xff] }
  0x51   :  { %554 = vmatpush.msrb.mxu3 %v1220_v31  ;;  %449 = vmatpush.msrb.mxu2 %v1082_v54 }
  0x52   :  { %411 = vmatpush.msrb.mxu1 %v1107_v63  ;;  %571 = vmatpush.msra.mxu0 %v982_v15 }
  0x53   :  { %560 = vmatpush.msrb.mxu3 %v1226_v44  ;;  %451 = vmatpush.msrb.mxu2 %v1107_v63 }
  0x54   :  { %413 = vmatpush.msrb.mxu1 %v1128_v13  ;;  %574 = vmatpush.msra.mxu0 %v985_v16 }
  0x55   :  { %729 = vmatpush.msra.mxu3 %v965_v3  ;;  %453 = vmatpush.msrb.mxu2 %v1128_v13 }
  0x56   :  { %415 = vmatpush.msrb.mxu1 %v1133_v26  ;;  %577 = vmatpush.msra.mxu0 %v991_v19 }
  0x57   :  { %417 = vmatmul.f32.vlgmr.msrb.gmra.mxu1 %v1131_v18  ;;  %731 = vmatpush.msra.mxu3 %v967_v4 }
  0x58   :  { %621 = vmatpush.msra.mxu1 %v965_v3  ;;  %580 = vmatpush.msra.mxu0 %v994_v20  ;;  %v1387_v3 = vld [vmem:[#allocation12_spill] sm:$0xff] }
  0x59   :  { %733 = vmatpush.msra.mxu3 %v969_v5  ;;  %455 = vmatpush.msrb.mxu2 %v1133_v26 }
  0x5a   :  { %623 = vmatpush.msra.mxu1 %v967_v4  ;;  %583 = vmatpush.msra.mxu0 %v997_v21  ;;  %v1388_v4 = vld [vmem:[#allocation13_spill] sm:$0xff] }
  0x5b   :  { %735 = vmatpush.msra.mxu3 %v971_v9  ;;  %662 = vmatpush.msra.mxu2 %v1001_v22 }
  0x5c   :  { %625 = vmatpush.msra.mxu1 %v969_v5  ;;  %586 = vmatpush.msra.mxu0 %v1018_v29  ;;  %v1389_v5 = vld [vmem:[#allocation14_spill] sm:$0xff] }
  0x5d   :  { %737 = vmatpush.msra.mxu3 %v973_v10  ;;  %666 = vmatpush.msra.mxu2 %v1004_v23  ;;  %v1394_v29 = vld [vmem:[#allocation18_spill] sm:$0xff] }
  0x5e   :  { %627 = vmatpush.msra.mxu1 %v971_v9  ;;  %589 = vmatpush.msra.mxu0 %v1387_v3  ;;  %v1390_v9 = vld [vmem:[#allocation15_spill] sm:$0xff] }
  0x5f   :  { %739 = vmatpush.msra.mxu3 %v975_v11  ;;  %670 = vmatpush.msra.mxu2 %v1007_v24 }
  0x60   :  { %629 = vmatpush.msra.mxu1 %v973_v10  ;;  %592 = vmatpush.msra.mxu0 %v1388_v4  ;;  %v1391_v10 = vld [vmem:[#allocation16_spill] sm:$0xff] }
  0x61   :  { %741 = vmatpush.msra.mxu3 %v987_v17  ;;  %674 = vmatpush.msra.mxu2 %v1013_v27 }
  0x62   :  { %631 = vmatpush.msra.mxu1 %v975_v11  ;;  %595 = vmatpush.msra.mxu0 %v1389_v5  ;;  %v1392_v11 = vld [vmem:[#allocation17_spill] sm:$0xff] }
  0x63   :  { %743 = vmatpush.msra.mxu3 %v1009_v25  ;;  %678 = vmatpush.msra.mxu2 %v1029_v33 }
  0x64   :  { %633 = vmatpush.msra.mxu1 %v987_v17  ;;  %598 = vmatpush.msra.mxu0 %v1390_v9 }
  0x65   :  { %745 = vmatpush.msra.mxu3 %v1015_v28  ;;  %682 = vmatpush.msra.mxu2 %v1033_v34 }
  0x66   :  { %635 = vmatpush.msra.mxu1 %v1009_v25  ;;  %601 = vmatpush.msra.mxu0 %v1391_v10 }
  0x67   :  { %747 = vmatpush.msra.mxu3 %v1035_v35  ;;  %686 = vmatpush.msra.mxu2 %v1050_v41 }
  0x68   :  { %637 = vmatpush.msra.mxu1 %v1015_v28  ;;  %604 = vmatpush.msra.mxu0 %v1392_v11 }
  0x69   :  { %749 = vmatpush.msra.mxu3 %v1059_v45  ;;  %690 = vmatpush.msra.mxu2 %v1073_v50 }
  0x6a   :  { %639 = vmatpush.msra.mxu1 %v1035_v35  ;;  %607 = vmatpush.msra.mxu0 %v1393_v14 }
  0x6b   :  { %751 = vmatpush.msra.mxu3 %v1075_v51  ;;  %694 = vmatpush.msra.mxu2 %v1091_v57 }
  0x6c   :  { %641 = vmatpush.msra.mxu1 %v1059_v45  ;;  %610 = vmatpush.msra.mxu0 %v1161_v47  ;;  %v817_v47 = vld [vmem:[#allocation5] ss:$0 sm:$0xff] }
  0x6d   :  { %753 = vmatpush.msra.mxu3 %v1082_v54  ;;  %698 = vmatpush.msra.mxu2 %v1105_v62 }
  0x6e   :  { %643 = vmatpush.msra.mxu1 %v1075_v51  ;;  %613 = vmatpush.msra.mxu0 %v1177_v60 }
  0x6f   :  { %755 = vmatpush.msra.mxu3 %v1107_v63  ;;  %702 = vmatpush.msra.mxu2 %v1126_v12 }
  0x70   :  { %645 = vmatpush.msra.mxu1 %v1082_v54 }
  0x71   :  { %757 = vmatpush.msra.mxu3 %v1128_v13  ;;  %706 = vmatpush.msra.mxu2 %v1144_v32 }
  0x72   :  { %647 = vmatpush.msra.mxu1 %v1107_v63 }
  0x73   :  { %759 = vmatpush.msra.mxu3 %v1133_v26  ;;  %710 = vmatpush.msra.mxu2 %v1150_v39 }
  0x74   :  { %649 = vmatpush.msra.mxu1 %v1128_v13 }
  0x75   :  { %714 = vmatpush.msra.mxu2 %v1174_v61 }
  0x76   :  { %651 = vmatpush.msra.mxu1 %v1133_v26 }
  0x77   :  { %718 = vmatpush.msra.mxu2 %v1188_v7 }
  0x79   :  { %722 = vmatpush.msra.mxu2 %v1199_v58 }
  0xb0   :  { %v118_v16 = vpop.f32.mrf.mxu0 }
  0xb4   :  { %v219_v15 = vpop.f32.mrf.mxu1  ;;  %v312_v21 = vpop.f32.mrf.mxu3 }
  0xb5   :  { %v220_v17 = vadd.f32 %v219_v15, %v118_v16 }
  0xb6   :  { %v273_v19 = vpop.f32.mrf.mxu2 }
  0xb7   :  { %v274_v20 = vadd.f32 %v273_v19, %v220_v17 }
  0xb9   :  { %v313_v22 = vadd.f32 %v312_v21, %v274_v20 }
  0xcc   :  { %v381_v23 = vpop.f32.mrf.mxu0 }
  0xcd   :  { %v382_v24 = vadd.f32 %v381_v23, %v313_v22 }
  0xd4   :  { %v418_v25 = vpop.f32.mrf.mxu1 }
  0xd5   :  { %v419_v27 = vadd.f32 %v418_v25, %v382_v24 }
  0xd7   :  { %v421_v28 = vmul.f32 0.03125, %v419_v27 }
  0xd9   :  { %v422_v33 = vsub.f32 %v1394_v29, %v421_v28 }
  0xdb   :  { %v423_v34 = vmul.f32 %v422_v33, %v422_v33 }
  0xdd   :  { %v456_v35 = vand.u32 4294901760, %v423_v34 }
  0xdf   :  { %v457_v37 = vsub.f32 %v423_v34, %v456_v35  ;;  %562 = vmatmul.f32.vlgmr.msrb.gmra.mxu3 %v456_v35 }
  0xe1   :  { %616 = vmatmul.f32.vlgmr.msra.gmra.mxu0 %v457_v37  ;;  %v458_v38 = vand.u32 4294901760, %v457_v37 }
  0xe3   :  { %655 = vmatmul.f32.vlgmr.msra.gmra.mxu1 %v458_v38  ;;  %v459_v40 = vsub.f32 %v457_v37, %v458_v38 }
  0xe5   :  { %v460_v41 = vand.u32 4294901760, %v459_v40 }
  0xe7   :  { %461 = vmatmul.f32.vlgmr.msrb.gmra.mxu2 %v460_v41  ;;  %761 = vmatmul.f32.vlgmr.msra.gmra.mxu3 %v456_v35 }
  0xef   :  { %724 = vmatmul.f32.vlgmr.msra.gmra.mxu2 %v456_v35 }
 0x15e   :  { %v617_v49 = vpop.f32.mrf.mxu0 }
 0x160   :  { %v656_v51 = vpop.f32.mrf.mxu1 }
 0x162   :  { %v563_v43 = vpop.f32.mrf.mxu3 }
 0x16a   :  { %v462_v45 = vpop.f32.mrf.mxu2  ;;  %v762_v57 = vpop.f32.mrf.mxu3 }
 0x16b   :  { %v564_v46 = vadd.f32 %v563_v43, %v462_v45 }
 0x16d   :  { %v618_v50 = vadd.f32 %v617_v49, %v564_v46 }
 0x16f   :  { %v657_v52 = vadd.f32 %v656_v51, %v618_v50 }
 0x172   :  { %v725_v54 = vpop.f32.mrf.mxu2 }
 0x173   :  { %v726_v56 = vadd.f32 %v725_v54, %v657_v52 }
 0x175   :  { %v763_v58 = vadd.f32 %v762_v57, %v726_v56 }
 0x177   :  { %v765_v59 = vmul.f32 0.032258064, %v763_v58 }
 0x179   :  { %819 = vrsqrt.f32 %v765_v59  ;;  %vm773_vm0 = vcmp.eq.f32.partialorder %v765_v59, inf  ;;  %v776_v13 = vand.u32 2147483648, %v765_v59  ;;  %vm775_vm1 = vcmp.eq.f32.partialorder %v765_v59, 0.0 }
 0x17f   :  { %v820_v62 = vpop.eup %819 }
 0x180   :  { %v767_v63 = vmul.f32 %v820_v62, %v765_v59 }
 0x182   :  { %v768_v0 = vmul.f32 %v820_v62, %v767_v63 }
 0x184   :  { %v769_v2 = vmul.f32 0.5, %v768_v0 }
 0x186   :  { %v770_v6 = vsub.f32 1.5, %v769_v2 }
 0x188   :  { %v771_v7 = vmul.f32 %v820_v62, %v770_v6 }
 0x18a   :  { %v772_v12 = vmul.f32 %v771_v7, %v765_v59 }
 0x18c   :  { %v774_v18 = vsel %vm773_vm0, %v765_v59, %v772_v12 }
 0x18d   :  { %v777_v26 = vsel %vm775_vm1, %v776_v13, %v774_v18 }
 0x18e   :  { %v778_v30 = vadd.f32 1e-06, %v777_v26 }
 0x190   :  { %821 = vrcp.f32 %v778_v30 }
 0x196   :  { %v822_v32 = vpop.eup %821 }
 0x197   :  { %v780_v36 = vmul.f32 %v822_v32, %v778_v30 }
 0x199   :  { %v781_v39 = vsub.f32 2.0, %v780_v36 }
 0x19b   :  { %v782_v42 = vmul.f32 %v822_v32, %v781_v39 }
 0x19d   :  { %v783_v48 = vmul.f32 %v782_v42, %v422_v33 }
 0x19f   :  { %v787_v61 = vmul.f32 %v817_v47, %v783_v48 }
 0x1a1   :  { %v791_v60 = vadd.f32 %v818_v53, %v787_v61 }
 0x1a3   :  { %792 = vst [vmem:[#allocation8] sm:$0xf] %v791_v60 }
 0x1a4   :  { %803 = dma.vmem_to_hbm [thread:$0]  %s799_s6, 64, %s801_s9, [#allocation4]  }
 0x1a5   :  { %923 = dma.done.wait [#allocation4], 64  }
 0x1a6   :  { %924 = vsyncadd [#allocation4], 4294967232 }
 0x1a7   :  { %808 = vsyncpa [#allocation3], 1 }
 0x1a8   :  { %809 = vsyncpa [#allocation6], 1 }
 0x1a9   :  { %810 = vsyncpa [#allocation4], 1 }

</bundles_post_ra>
